<compile_context>
chip_gen: v6e
topology: v6e:2x2x1
jax: 0.10.0
libtpu: 0.0.40
codegen_flags: <defaults>
</compile_context>

<pallas_src>
import functools
import math

import jax
import jax.numpy as jnp
from jax.experimental import pallas as pl
from jax.experimental.pallas import tpu as pltpu


_LANE = 128
_BYPASS_BYTES = 2 * 1024 * 1024        # below this, the fused XLA slice wins


def _round_down(v, m):
    return (v // m) * m


def _round_up(v, m):
    return -(-v // m) * m


def _sublane(dtype):
    """Second-to-last-dim packing granule: 8 (f32), 16 (bf16), 32 (int8/fp8)."""
    bits = jnp.dtype(dtype).itemsize * 8
    return max(8, 256 // bits)


def _tuning():
    """(per-step VMEM budget, vmem_limit_bytes, min grid steps) per chip.

    Defaults are safe for v7x (64 MiB physical VMEM, 2 TensorCores). On
    128 MiB parts (v5e/v6e, single TC) we grow blocks and relax the step
    floor so fewer, larger DMAs run closer to the HBM roofline.
    """
    budget, limit, min_steps = 8 << 20, 32 << 20, 4
    try:
        info = pltpu.get_tpu_info()
        vmem = getattr(info, "vmem_capacity_bytes", 0) or 0
        if vmem >= (100 << 20):
            budget, limit, min_steps = 16 << 20, 64 << 20, 3
    except Exception:
        pass
    return budget, limit, min_steps


def _largest_lane_tile(g, cap):
    """Largest d with d | g, d % 128 == 0 and d <= cap (0 if none exists)."""
    if g <= 0 or g % _LANE or cap < _LANE:
        return 0
    m = g // _LANE
    best, e = 0, 1
    while e * e <= m:
        if m % e == 0:
            for f in (e, m // e):
                d = _LANE * f
                if cap >= d > best:
                    best = d
        e += 1
    return best


def _pick_row_block(total_rows, sublane, budget_rows, want_tiles):
    """Rows per block for a second-to-last block dim: a multiple of `sublane`
    (or the full extent), capped by the VMEM budget, and leaving roughly
    `want_tiles` grid steps along this axis for pipelining / core sharding."""
    if total_rows <= sublane:
        return total_rows                                   # full dim: legal
    br = min(total_rows, max(sublane, _round_down(budget_rows, sublane)))
    if want_tiles > 1:
        tgt = _round_up(pl.cdiv(total_rows, want_tiles), sublane)
        br = min(br, max(sublane, tgt))
    return total_rows if br >= total_rows else br


def _copy_kernel(x_ref, o_ref):
    # Crop already expressed by the input BlockSpec window: straight copy.
    o_ref[...] = x_ref[...]


def _slice_kernel(length, w_out, x_ref, o_ref):
    # Static lane slice of the (br, th, W) block == x[..., length:-length].
    o_ref[...] = x_ref[:, :, length:length + w_out]


def truncation2d(x: jax.Array, length: int, *, allow_xla_bypass: bool = True):
    """Pallas implementation of Truncation2d.forward.

    Args:
      x: (N, C, H, W) array.
      length: columns cropped from each side of the last axis.
      allow_xla_bypass: if True, KiB-scale inputs use a plain fused XLA slice.
    Returns:
      (N, C, H, W - 2*length) array, same dtype as x.
    """
    n, c, h, w = x.shape
    if length == 0:
        # PyTorch: x[:, :, :, 0:-0] == x[:, :, :, 0:0] -> zero-width output.
        return x[:, :, :, 0:0]
    assert 0 < 2 * length < w, "truncation length too large for input width"
    w_out = w - 2 * length
    itemsize = jnp.dtype(x.dtype).itemsize
    total_bytes = n * c * h * (w + w_out) * itemsize

    if allow_xla_bypass and total_bytes < _BYPASS_BYTES:
        # Tiny tensors: a fused XLA slice is strictly faster than a custom
        # call (no fusion with producers/consumers, ~0.35us per grid step).
        return x[:, :, :, length:length + w_out]

    budget, vmem_limit, min_steps = _tuning()
    sub = _sublane(x.dtype)

    # ---- lane-aligned fast path: crop expressed purely in the DMA window ----
    tile_w_cap = budget // (4 * sub * itemsize)             # dbl-buf in + out
    tile_w = _largest_lane_tile(math.gcd(length, w_out), tile_w_cap)
    if tile_w:
        rows = n * c * h
        w_tiles = w_out // tile_w
        len_blocks = length // tile_w
        budget_rows = max(1, budget // (4 * tile_w * itemsize))
        br = _pick_row_block(rows, sub, budget_rows,
                             pl.cdiv(min_steps, w_tiles))
        grid = (pl.cdiv(rows, br), w_tiles)
        out2d = pl.pallas_call(
            _copy_kernel,
            out_shape=jax.ShapeDtypeStruct((rows, w_out), x.dtype),
            grid_spec=pltpu.PrefetchScalarGridSpec(
                num_scalar_prefetch=0,
                grid=grid,
                in_specs=[pl.BlockSpec((br, tile_w),
                                       lambda i, k: (i, len_blocks + k))],
                out_specs=pl.BlockSpec((br, tile_w), lambda i, k: (i, k)),
            ),
            compiler_params=pltpu.CompilerParams(
                dimension_semantics=("parallel", "parallel"),
                vmem_limit_bytes=vmem_limit),
            cost_estimate=pl.CostEstimate(
                flops=0, transcendentals=0,
                bytes_accessed=2 * rows * w_out * itemsize),
        )(x.reshape(rows, w))
        return out2d.reshape(n, c, h, w_out)

    # ---- general path: whole-W rows, crop as a static in-register slice ----
    r = n * c
    row_bytes = 2 * (w + w_out) * itemsize                  # dbl-buf in + out
    th_budget = max(1, budget // row_bytes)
    th = h if th_budget >= h else min(h, max(sub, _round_down(th_budget, sub)))
    h_tiles = pl.cdiv(h, th)
    br = max(1, min(r, budget // (row_bytes * th)))
    want_r_tiles = pl.cdiv(min_steps, h_tiles)
    if want_r_tiles > 1:
        br = max(1, min(br, pl.cdiv(r, want_r_tiles)))
    grid = (pl.cdiv(r, br), h_tiles)

    out3d = pl.pallas_call(
        functools.partial(_slice_kernel, length, w_out),
        out_shape=jax.ShapeDtypeStruct((r, h, w_out), x.dtype),
        grid_spec=pltpu.PrefetchScalarGridSpec(
            num_scalar_prefetch=0,
            grid=grid,
            # Last block dims equal the full W / W_out extents, so the (8,128)
            # tiling constraint is satisfied at arbitrary / unaligned widths.
            in_specs=[pl.BlockSpec((br, th, w), lambda i, j: (i, j, 0))],
            out_specs=pl.BlockSpec((br, th, w_out), lambda i, j: (i, j, 0)),
        ),
        compiler_params=pltpu.CompilerParams(
            dimension_semantics=("parallel", "parallel"),
            vmem_limit_bytes=vmem_limit),
        cost_estimate=pl.CostEstimate(
            flops=0, transcendentals=0,
            bytes_accessed=r * h * (w + w_out) * itemsize),
    )(x.reshape(r, h, w))
    return out3d.reshape(n, c, h, w_out)


if __name__ == "__main__":
    key = jax.random.PRNGKey(0)
    k1, k2 = jax.random.split(key)

    # 1) General (unaligned-crop) Pallas path: NCHW = (2, 4, 16, 16), length=2.
    length = 2
    x = jax.random.normal(k1, (2, 4, 16, 16), dtype=jnp.float32)
    out = jax.block_until_ready(
        truncation2d(x, length, allow_xla_bypass=False))
    ref = x[:, :, :, length:-length]
    assert out.shape == ref.shape, (out.shape, ref.shape)
    assert jnp.array_equal(out, ref), "general path mismatch vs reference"

    # 2) Lane-aligned Pallas fast path (crop lives entirely in the DMA window).
    length2 = 128
    x2 = jax.random.normal(k2, (1, 2, 8, 512), dtype=jnp.float32)
    out2 = jax.block_until_ready(
        truncation2d(x2, length2, allow_xla_bypass=False))
    ref2 = x2[:, :, :, length2:-length2]
    assert out2.shape == ref2.shape, (out2.shape, ref2.shape)
    assert jnp.array_equal(out2, ref2), "aligned path mismatch vs reference"

    # 3) Small-input bypass (default call): fused XLA slice.
    out3 = jax.block_until_ready(truncation2d(x, length))
    assert jnp.array_equal(out3, ref), "bypass mismatch vs reference"

    # 4) length=0 matches the PyTorch module's degenerate empty slice.
    out4 = truncation2d(x, 0)
    assert out4.shape == (2, 4, 16, 0), out4.shape

    print("KERNEL_OK")
</pallas_src>

<mosaic_0001>
module attributes {stable_mosaic.version = 11 : i64} {
  func.func @_slice_kernel(%arg0: i32, %arg1: i32, %arg2: memref<2x16x16xf32, #tpu.memory_space<vmem>>, %arg3: memref<2x16x12xf32, #tpu.memory_space<vmem>>) attributes {dimension_semantics = [#tpu.dimension_semantics<parallel>, #tpu.dimension_semantics<parallel>], iteration_bounds = array<i64: 4, 1>, scalar_prefetch = 0 : i64, scratch_operands = 0 : i64, tpu.core_type = #tpu.core_type<tc>, window_params = [{transform_indices = @transform_0, window_bounds = array<i64: 2, 16, 16>}, {transform_indices = @transform_1, window_bounds = array<i64: 2, 16, 12>}]} {
    %c0 = arith.constant 0 : index
    %c0_0 = arith.constant 0 : index
    %c2 = arith.constant 2 : index
    %0 = vector.load %arg2[%c0, %c0_0, %c2] : memref<2x16x16xf32, #tpu.memory_space<vmem>>, vector<2x16x12xf32>
    %c0_1 = arith.constant 0 : index
    %c0_2 = arith.constant 0 : index
    %c0_3 = arith.constant 0 : index
    %1 = vector.load %arg3[%c0_1, %c0_2, %c0_3] : memref<2x16x12xf32, #tpu.memory_space<vmem>>, vector<2x16x12xf32>
    tpu.vector_store %arg3[%c0_1, %c0_2, %c0_3], %0 {strides = array<i32>} : memref<2x16x12xf32, #tpu.memory_space<vmem>>, vector<2x16x12xf32>,
    return
  }
  func.func @transform_0(%arg0: i32, %arg1: i32) -> (i32, i32, i32) {
    %c0_i32 = arith.constant 0 : i32
    %c0_i32_0 = arith.constant 0 : i32
    return %arg0, %arg1, %c0_i32 : i32, i32, i32
  }
  func.func @transform_1(%arg0: i32, %arg1: i32) -> (i32, i32, i32) {
    %c0_i32 = arith.constant 0 : i32
    %c0_i32_0 = arith.constant 0 : i32
    return %arg0, %arg1, %c0_i32 : i32, i32, i32
  }
}

</mosaic_0001>

<bundles_post_ra>
// kernel: tpu_custom_call.1
= control target key start
LH: loop header
LB: loop body
LE: loop exit
PB: predicated region body
PF: predicated region fallthrough
CT: control target
= control target key end

     0   :  { %6 = vsyncpa [#allocation3], 0  ;;  %s558_s0 = inlined_call_operand.hbm [shape: f32[8,16,16], index: 0, kind: input, shape index: {}]   ;;  %s559_s1 = inlined_call_operand.vmem [shape: f32[8,16,12], index: 1, kind: output, shape index: {}]  }
   0x1   :  { %8 = vsyncpa [#allocation3 + $0x1], 0  ;;  %s463_s6 = smov 0   ;;  %s465_s7 = smov 0  }
   0x2   :  { %s467_s8 = smov 0   ;;  %s469_s9 = smov 0  }
   0x3   :  { %s471_s10 = smov 0   ;;  %s473_s11 = smov 0  }
   0x4 LB: > { %s293_s12 = sadd.s32 4294967295, %s447_s11   ;;  %s26_s13 = sadd.s32 1, %s443_s10  ;;  %s447_s11 = sphi %s473_s11, %s14_s11   ;;  %s443_s10 = sphi %s471_s10, %s567_s10   ;;  %s439_s9 = sphi %s469_s9, %s566_s9   ;;  %s435_s8 = sphi %s467_s8, %s565_s8   ;;  %s431_s7 = sphi %s465_s7, %s564_s7   ;;  %s427_s6 = sphi %s463_s6, %s563_s6  }
   0x5   : > { %p28_p0 = scmp.ge.s32.totalorder %s26_s13, 4  ;;  %s35_s14 = sadd.s32 1, %s435_s8 }
   0x6   : > { %p42_p1 = scmp.ne.s32.totalorder %s435_s8, %s431_s7  ;;  %p43_p2 = scmp.eq.s32.totalorder %s447_s11, 0 }
   0x7   : > { %s569_s13 = smov (%p28_p0, %s26_s13), 0  ;;  %p48_p4 = scmp.ne.s32.totalorder %s431_s7, %s427_s6 }
   0x8   : > { %p499_p3 = por %p43_p2, %p42_p1  ;;  %s30_s16 = ssub.s32 %s443_s10, %s569_s13 }
   0x9   : > { %p49_p5 = scmp.eq.s32.totalorder %s293_s12, 0  ;;  %p33_p6 = scmp.eq.s32.totalorder %s30_s16, 0 }
   0xa   : > { %p317_p8 = scmp.lt.s32.totalorder %s447_s11, 4  ;;  %s100_s19 = sand.u32 1, %s435_s8  }
   0xb   : > { %p506_p7 = por %p49_p5, %p48_p4  ;;  %s309_s20 = sshll.u32 %s443_s10, 9 }
   0xc   : > { %s512_s18 = scalar_select %p33_p6, %s435_s8, %s35_s14  }
   0xd   : > { %s297_s21 = sshll.u32 %s100_s19, 5  ;;  %s113_s24 = scalar_lea.hbm %s558_s0, %s309_s20 }
   0xe   : > { %s104_s25 = scalar_lea.vmem [#allocation2], %s297_s21  ;;  %p521_p9 = pnand %p317_p8, %p499_p3 }
   0xf   : > { %s114_s26 = sshll.u32 %s104_s25, 4  ;;  %s101_s28 = scalar_lea.sflag [#allocation3], %s100_s19  ;;  %s115_s26 = int_to_ptr.vmem [resolvable:$true] %s114_s26 }
  0x10   : > { %p371_p10 = pneg %p521_p9  ;;  %s382_s29 = scalar_lea.vmem %s115_s26, 512 }
  0x11   : > { %p383_p11 = scmp.ne.s32.totalorder %s115_s26, %s382_s29  ;;  %s449_s30 = smov [#allocation2]  }
  0x12   : > { %s387_s2 = sshll.u32 %s449_s30, 4  ;;  %s388_s2 = int_to_ptr.vmem [resolvable:$false] %s387_s2 }
  0x13   : > { %p385_p12 = pnand %p383_p11, %p371_p10  ;;  %s389_s3 = scalar_lea.vmem %s388_s2, 1024 }
  0x14   : > { %p390_p0 = scmp.lt.s32.totalorder %s115_s26, %s388_s2  ;;  %p391_p1 = scmp.lt.s32.totalorder %s389_s3, %s382_s29 }
  0x15   : > { %p386_p13 = pneg %p385_p12 }
  0x16   : > { %p392_p2 = por %p391_p1, %p390_p0 }
  0x18   : > { %p393_p3 = pnand %p392_p2, %p386_p13 }
  0x1a   : > { %396 = shalt.err (!%p393_p3)
}
  0x1b   : > { %s450_s4 = smov 128   ;;  %s451_s5 = smov 8  }
  0x1c   : > { %316 = dma.hbm_to_vmem [thread:$0]  (!%p521_p9), %s113_s24, 512, %s115_s26, %s101_s28, %s450_s4, %s450_s4, %s451_s5  }
  0x1d   : > { %p301_p4 = scmp.ge.s32.totalorder %s447_s11, 1  ;;  %p122_p5 = scmp.lt.s32.totalorder %s447_s11, 5 }
  0x1f   : > { %p123_p6 = pnand %p301_p4, %p122_p5 }
  0x20   : > { %s128_s6 = sand.u32 (!%p123_p6), 1, %s431_s7  }
  0x21   : > { %126 = sbr.rel (%p123_p6) target bundleno = 160 (0xa0), region = 24  ;;  %s302_s12 = sshll.u32 (!%p123_p6), %s128_s6, 5 }
  0x22   : > { %s129_s14 = scalar_lea.sflag (!%p123_p6), [#allocation3], %s128_s6  ;;  %s132_s15 = scalar_lea.vmem (!%p123_p6), [#allocation2], %s302_s12 }
  0x26   : > { %422 = dma.done.wait (%p506_p7), %s129_s14, 512  }
  0x27   : > { %424 = vsyncadd (%p506_p7), %s129_s14, 4294966784  ;;  %v170_v0 = vld [vmem:[%s132_s15] sm:$0xff]  ;;  %v172_v1 = vld [vmem:[%s132_s15 + $0x10] sm:$0xff]  ;;  %s452_s16 = smov 126   ;;  %s303_s19 = sshll.u32 %s439_s9, 1  ;;  %vm190_vm0 = vcmask 97280  }
  0x28   : > { %178 = vrot.lane.b32.xlu0 %v170_v0, %s452_s16  ;;  %182 = vrot.lane.b32.xlu1 %v172_v1, %s452_s16  ;;  %v171_v2 = vld [vmem:[%s132_s15 + $0x8] sm:$0xff]  ;;  %v173_v3 = vld [vmem:[%s132_s15 + $0x18] sm:$0xff]  ;;  %p160_p8 = scmp.lt.s32.totalorder %s303_s19, 7 }
  0x2a   : > { %s571_s19 = smov (!%p160_p8, %s303_s19), 7 }
  0x2b   : > { %s310_s20 = sshll.u32 %s571_s19, 4 }
  0x2c   : > { %180 = vrot.lane.b32.xlu0 %v171_v2, %s452_s16  ;;  %184 = vrot.lane.b32.xlu1 %v173_v3, %s452_s16  ;;  %s167_s23 = scalar_lea.vmem %s559_s1, %s310_s20 }
  0x9a   : > { %v179_v4 = vpop.permute.xlu0 %178  ;;  %v183_v5 = vpop.permute.xlu1 %182 }
  0x9b   : > { %191 = vst.msk [vmem:[%s167_s23] sm:$0xff] %vm190_vm0, %v179_v4  ;;  %193 = vst.msk [vmem:[%s167_s23 + $0x10] sm:$0xff] %vm190_vm0, %v183_v5 }
  0x9e   : > { %v181_v6 = vpop.permute.xlu0 %180  ;;  %v185_v7 = vpop.permute.xlu1 %184 }
  0x9f   : > { %192 = vst.msk [vmem:[%s167_s23 + $0x8] sm:$0xff] %vm190_vm0, %v181_v6  ;;  %194 = vst.msk [vmem:[%s167_s23 + $0x18] sm:$0xff] %vm190_vm0, %v185_v7 }
  0xa0 PF: > { %s14_s11 = sadd.s32 1, %s447_s11   ;;  %s563_s6 = smov %s431_s7 }
  0xa1   : > { %p11_p7 = scmp.ge.s32.totalorder %s14_s11, 6   ;;  %s564_s7 = smov %s435_s8 }
  0xa2   : > { %s565_s8 = smov %s512_s18  ;;  %s566_s9 = smov %s443_s10 }
  0xa3   : > { %s567_s10 = smov %s569_s13  ;;  %13 = sbr.rel (!%p11_p7) target bundleno = 4 (0x4), region = 64 }
  0xa8   :  { %228 = vsyncpa [#allocation3], 1 }
  0xa9   :  { %230 = vsyncpa [#allocation3 + $0x1], 1 }

</bundles_post_ra>
